<compile_context>
chip_gen: v5e
topology: v5e:2x2
jax: 0.10.0
libtpu: 0.0.40
codegen_flags: <defaults>
</compile_context>

<pallas_src>
import functools
import math

import jax
import jax.numpy as jnp
from jax.experimental import pallas as pl
from jax.experimental.pallas import tpu as pltpu


# ----------------------------- generation-aware config ---------------------

def _vmem_limit_bytes():
    """3/4 of physical VMEM: ~48 MiB on v7x (64 MiB), ~96 MiB on v5e/v6e (128 MiB).
    Leaves headroom for double-buffers and compiler-internal scratch."""
    try:
        cap = int(pltpu.get_tpu_info().vmem_capacity_bytes)
        return (cap * 3) // 4
    except Exception:
        return 64 * 1024 * 1024          # safe fallback (worked previously)


_VMEM_LIMIT = _vmem_limit_bytes()

_SUBLANE = 16    # bf16 packs 16 rows per sublane group
_LANE = 128


def _cparams(*dim_sem):
    return pltpu.CompilerParams(dimension_semantics=dim_sem,
                                vmem_limit_bytes=_VMEM_LIMIT)


def _pick_tile(dim, target, granule):
    """Largest divisor of `dim` that is <= target and a multiple of `granule`.
    Falls back to the full dim (a single block is always legal); callers that
    cannot afford a full-dim block must pre-pad (see LM-head vocab padding)."""
    if dim <= target:
        return dim
    t = (target // granule) * granule
    while t >= granule:
        if dim % t == 0:
            return t
        t -= granule
    return dim


def _round_up(n, m):
    return ((n + m - 1) // m) * m


def _ln_f32(h, g, beta, eps):
    """LayerNorm on an f32 tile (statistics always in f32)."""
    mu = jnp.mean(h, axis=-1, keepdims=True)
    d = h - mu
    var = jnp.mean(d * d, axis=-1, keepdims=True)
    return d * jax.lax.rsqrt(var + eps) * g + beta


# ----------------------------- generic tiled matmul ------------------------

def _matmul_kernel(x_ref, w_ref, b_ref, o_ref, acc_ref):
    """Tiled x @ w + b with an f32 accumulator over the K grid axis."""
    @pl.when(pl.program_id(2) == 0)
    def _():
        acc_ref[...] = jnp.zeros_like(acc_ref)

    acc_ref[...] += jnp.dot(x_ref[...], w_ref[...],
                            preferred_element_type=jnp.float32)

    @pl.when(pl.program_id(2) == pl.num_programs(2) - 1)
    def _():
        o_ref[...] = (acc_ref[...] + b_ref[...]).astype(o_ref.dtype)


def linear(x2d, w, b, out_dtype=None,
           tm_target=512, tn_target=512, tk_target=512):
    """x2d: (M, K) bf16 @ w: (K, N) bf16 + b: (N,) f32 -> (M, N)."""
    M, K = x2d.shape
    K2, N = w.shape
    assert K == K2
    out_dtype = out_dtype or x2d.dtype
    tm = _pick_tile(M, tm_target, _SUBLANE)
    tn = _pick_tile(N, tn_target, _LANE)
    tk = _pick_tile(K, tk_target, _LANE)
    return pl.pallas_call(
        _matmul_kernel,
        out_shape=jax.ShapeDtypeStruct((M, N), out_dtype),
        grid=(M // tm, N // tn, K // tk),
        in_specs=[
            pl.BlockSpec((tm, tk), lambda i, j, k: (i, k)),
            pl.BlockSpec((tk, tn), lambda i, j, k: (k, j)),
            pl.BlockSpec((1, tn), lambda i, j, k: (0, j)),
        ],
        out_specs=pl.BlockSpec((tm, tn), lambda i, j, k: (i, j)),
        scratch_shapes=[pltpu.VMEM((tm, tn), jnp.float32)],
        compiler_params=_cparams("parallel", "parallel", "arbitrary"),
    )(x2d, w, b.reshape(1, N).astype(jnp.float32))


# ----------------------------- flash attention ------------------------------

def _attn_kernel(q_ref, k_ref, v_ref, bias_ref, o_ref, m_ref, l_ref, acc_ref,
                 *, n_heads, head_dim, scale):
    # q_ref: (tq, H)   k_ref/v_ref: (tkv, H)   bias_ref: (1, tkv)
    # scratch: m/l (tq, n_heads) f32 running max / sum, acc (tq, H) f32
    kvi = pl.program_id(2)

    @pl.when(kvi == 0)
    def _():
        m_ref[...] = jnp.full_like(m_ref, -1e30)
        l_ref[...] = jnp.zeros_like(l_ref)
        acc_ref[...] = jnp.zeros_like(acc_ref)

    bias = bias_ref[...]                                   # (1, tkv) f32

    # Heads use STATIC per-head column slices of the refs (zero-cost views:
    # only the needed (tq,Dh)/(tkv,Dh) columns are loaded), and every head
    # iteration ends in scratch-ref stores so no cross-head values stay live.
    # TODO(synk): a head grid axis would need Dh-wide (non-128) lane blocks and
    # dynamic lane offsets under lax.fori_loop are not reliably lowered, so the
    # head loop stays a static unroll.
    for h in range(n_heads):
        lo = h * head_dim
        q = q_ref[:, lo:lo + head_dim] * scale             # scale folded into Q (bf16)
        k = k_ref[:, lo:lo + head_dim]
        v = v_ref[:, lo:lo + head_dim]
        s = jnp.einsum("qd,kd->qk", q, k,
                       preferred_element_type=jnp.float32) + bias   # (tq, tkv) f32
        m_prev = m_ref[:, h:h + 1]
        m_new = jnp.maximum(m_prev, jnp.max(s, axis=-1, keepdims=True))
        corr = jnp.exp(m_prev - m_new)                     # (tq, 1)
        p = jnp.exp(s - m_new)                             # unnormalized probs
        l_ref[:, h:h + 1] = corr * l_ref[:, h:h + 1] + jnp.sum(p, -1, keepdims=True)
        acc_ref[:, lo:lo + head_dim] = (
            corr * acc_ref[:, lo:lo + head_dim]
            + jnp.dot(p.astype(v.dtype), v, preferred_element_type=jnp.float32))
        m_ref[:, h:h + 1] = m_new

    @pl.when(kvi == pl.num_programs(2) - 1)
    def _():
        # Normalize AFTER the PV matmul (per-head (tq,Dh) multiply instead of
        # two (tq,S) multiplies), then one lane-dense (tq, H) store.
        inv = pl.reciprocal(l_ref[...], approx=True)       # (tq, n_heads)
        for h in range(n_heads):
            lo = h * head_dim
            acc_ref[:, lo:lo + head_dim] = acc_ref[:, lo:lo + head_dim] * inv[:, h:h + 1]
        o_ref[...] = acc_ref[...].astype(o_ref.dtype)


def attention(q, k, v, mask_bias, n_heads, tq_target=256, tkv_target=128):
    """q/k/v: (B, S, H) bf16; mask_bias: (B, 1, S) f32 -> context (B, S, H) bf16."""
    B, S, H = q.shape
    assert H % n_heads == 0
    Dh = H // n_heads
    tq = _pick_tile(S, tq_target, _SUBLANE)
    tkv = _pick_tile(S, tkv_target, _LANE)     # also the mask-bias lane width
    kern = functools.partial(_attn_kernel, n_heads=n_heads, head_dim=Dh,
                             scale=1.0 / math.sqrt(Dh))
    return pl.pallas_call(
        kern,
        out_shape=jax.ShapeDtypeStruct((B, S, H), q.dtype),
        grid=(B, S // tq, S // tkv),
        in_specs=[
            pl.BlockSpec((None, tq, H), lambda b, qi, ki: (b, qi, 0)),
            pl.BlockSpec((None, tkv, H), lambda b, qi, ki: (b, ki, 0)),
            pl.BlockSpec((None, tkv, H), lambda b, qi, ki: (b, ki, 0)),
            pl.BlockSpec((None, 1, tkv), lambda b, qi, ki: (b, 0, ki)),
        ],
        out_specs=pl.BlockSpec((None, tq, H), lambda b, qi, ki: (b, qi, 0)),
        scratch_shapes=[
            pltpu.VMEM((tq, n_heads), jnp.float32),   # running max per head
            pltpu.VMEM((tq, n_heads), jnp.float32),   # running sum per head
            pltpu.VMEM((tq, H), jnp.float32),         # unnormalized context
        ],
        compiler_params=_cparams("parallel", "parallel", "arbitrary"),
    )(q, k, v, mask_bias)


# --------------------- fused out-proj + DeepNorm residual + LN --------------

def _proj_ln_kernel(inp_ref, res_ref, w_ref, b_ref, g_ref, beta_ref, o_ref,
                    acc_ref, *, alpha, eps):
    # out = LN(alpha * res + inp @ w + b), K-tiled with an f32 accumulator.
    @pl.when(pl.program_id(1) == 0)
    def _():
        acc_ref[...] = jnp.zeros_like(acc_ref)

    acc_ref[...] += jnp.dot(inp_ref[...], w_ref[...],
                            preferred_element_type=jnp.float32)

    @pl.when(pl.program_id(1) == pl.num_programs(1) - 1)
    def _():
        h = res_ref[...].astype(jnp.float32) * alpha + acc_ref[...] + b_ref[...]
        o_ref[...] = _ln_f32(h, g_ref[...], beta_ref[...], eps).astype(o_ref.dtype)


def projection_layernorm(inp2d, res2d, w, b, gamma, beta, alpha,
                         eps=1e-5, tm_target=256, tk_target=512):
    M, K = inp2d.shape
    K2, H = w.shape
    assert K == K2
    tm = _pick_tile(M, tm_target, _SUBLANE)
    tk = _pick_tile(K, tk_target, _LANE)
    return pl.pallas_call(
        functools.partial(_proj_ln_kernel, alpha=alpha, eps=eps),
        out_shape=jax.ShapeDtypeStruct((M, H), res2d.dtype),
        grid=(M // tm, K // tk),
        in_specs=[
            pl.BlockSpec((tm, tk), lambda i, kk: (i, kk)),
            pl.BlockSpec((tm, H), lambda i, kk: (i, 0)),
            pl.BlockSpec((tk, H), lambda i, kk: (kk, 0)),
            pl.BlockSpec((1, H), lambda i, kk: (0, 0)),
            pl.BlockSpec((1, H), lambda i, kk: (0, 0)),
            pl.BlockSpec((1, H), lambda i, kk: (0, 0)),
        ],
        out_specs=pl.BlockSpec((tm, H), lambda i, kk: (i, 0)),
        scratch_shapes=[pltpu.VMEM((tm, H), jnp.float32)],
        compiler_params=_cparams("parallel", "arbitrary"),
    )(inp2d, res2d, w, b.reshape(1, H).astype(jnp.float32),
      gamma.reshape(1, H).astype(jnp.float32),
      beta.reshape(1, H).astype(jnp.float32))


# ------------------------ fused FFN + DeepNorm residual + LN ----------------

def _ffn_ln_kernel(x_ref, w1_ref, b1_ref, w2_ref, b2_ref, g_ref, beta_ref,
                   o_ref, acc_ref, *, alpha, eps):
    # F-tiled: per F-chunk compute GELU(x @ w1_f + b1_f) @ w2_f into the f32
    # accumulator; the (tm, tf) intermediate never leaves VMEM/vregs.
    fi = pl.program_id(1)

    @pl.when(fi == 0)
    def _():
        acc_ref[...] = jnp.zeros_like(acc_ref)

    x = x_ref[...]                                                  # (tm, H) bf16
    h = jnp.dot(x, w1_ref[...], preferred_element_type=jnp.float32) + b1_ref[...]
    # tanh-approximate GELU (EUP tanh).
    # TODO(synk): swap in exact erf GELU for bit-parity with PyTorch nn.GELU.
    c = math.sqrt(2.0 / math.pi)
    act = 0.5 * h * (1.0 + jnp.tanh(c * (h + 0.044715 * h * h * h)))
    acc_ref[...] += jnp.dot(act.astype(w2_ref.dtype), w2_ref[...],
                            preferred_element_type=jnp.float32)

    @pl.when(fi == pl.num_programs(1) - 1)
    def _():
        r = x.astype(jnp.float32) * alpha + acc_ref[...] + b2_ref[...]
        o_ref[...] = _ln_f32(r, g_ref[...], beta_ref[...], eps).astype(o_ref.dtype)


def ffn_layernorm(x2d, w1, b1, w2, b2, gamma, beta, alpha,
                  eps=1e-5, tm_target=256, tf_target=512):
    M, H = x2d.shape
    H2, F = w1.shape
    assert H == H2
    tm = _pick_tile(M, tm_target, _SUBLANE)
    tf = _pick_tile(F, tf_target, _LANE)
    return pl.pallas_call(
        functools.partial(_ffn_ln_kernel, alpha=alpha, eps=eps),
        out_shape=jax.ShapeDtypeStruct((M, H), x2d.dtype),
        grid=(M // tm, F // tf),
        in_specs=[
            pl.BlockSpec((tm, H), lambda i, f: (i, 0)),
            pl.BlockSpec((H, tf), lambda i, f: (0, f)),
            pl.BlockSpec((1, tf), lambda i, f: (0, f)),
            pl.BlockSpec((tf, H), lambda i, f: (f, 0)),
            pl.BlockSpec((1, H), lambda i, f: (0, 0)),
            pl.BlockSpec((1, H), lambda i, f: (0, 0)),
            pl.BlockSpec((1, H), lambda i, f: (0, 0)),
        ],
        out_specs=pl.BlockSpec((tm, H), lambda i, f: (i, 0)),
        scratch_shapes=[pltpu.VMEM((tm, H), jnp.float32)],
        compiler_params=_cparams("parallel", "arbitrary"),
    )(x2d, w1, b1.reshape(1, F).astype(jnp.float32),
      w2, b2.reshape(1, H).astype(jnp.float32),
      gamma.reshape(1, H).astype(jnp.float32),
      beta.reshape(1, H).astype(jnp.float32))


# ----------------------------- plain LayerNorm ------------------------------

def _ln_kernel(x_ref, g_ref, b_ref, o_ref, *, eps):
    x = x_ref[...].astype(jnp.float32)
    o_ref[...] = _ln_f32(x, g_ref[...], b_ref[...], eps).astype(o_ref.dtype)


def layernorm(x2d, gamma, beta, eps=1e-5, tm_target=512):
    M, H = x2d.shape
    tm = _pick_tile(M, tm_target, _SUBLANE)
    return pl.pallas_call(
        functools.partial(_ln_kernel, eps=eps),
        out_shape=jax.ShapeDtypeStruct((M, H), x2d.dtype),
        grid=(M // tm,),
        in_specs=[
            pl.BlockSpec((tm, H), lambda i: (i, 0)),
            pl.BlockSpec((1, H), lambda i: (0, 0)),
            pl.BlockSpec((1, H), lambda i: (0, 0)),
        ],
        out_specs=pl.BlockSpec((tm, H), lambda i: (i, 0)),
        compiler_params=_cparams("parallel"),
    )(x2d, gamma.reshape(1, H).astype(jnp.float32),
      beta.reshape(1, H).astype(jnp.float32))


# ----------------------------- model wrapper -------------------------------

def deepnet_block_apply(hidden, mask_bias, p, n_heads, alpha):
    """One DeepNet encoder block: MHA + DeepNorm LN, FFN + DeepNorm LN."""
    B, S, H = hidden.shape
    x2 = hidden.reshape(B * S, H)

    # separate Q/K/V projections keep attention BlockSpecs H-wide / lane-dense
    # and avoid DMAing unused QKV columns while streaming K/V chunks
    q = linear(x2, p["wq"], p["bq"]).reshape(B, S, H)
    k = linear(x2, p["wk"], p["bk"]).reshape(B, S, H)
    v = linear(x2, p["wv"], p["bv"]).reshape(B, S, H)

    ctx = attention(q, k, v, mask_bias, n_heads)                   # (B, S, H)

    # attention-out projection fused with DeepNorm residual + LayerNorm
    x2 = projection_layernorm(ctx.reshape(B * S, H), x2,
                              p["wo"], p["bo"], p["ln1_g"], p["ln1_b"], alpha)

    # FFN (w1 + GELU + w2) fused with DeepNorm residual + LayerNorm
    x2 = ffn_layernorm(x2, p["w1"], p["b1"], p["w2"], p["b2"],
                       p["ln2_g"], p["ln2_b"], alpha)

    return x2.reshape(B, S, H), mask_bias


def pipeline_deepnet_forward(params, input_ids, attention_mask, *, n_heads):
    # embedding(input_ids) -> hidden_states (glue: table gather outside Pallas)
    hidden = jnp.take(params["embed"], input_ids, axis=0)          # (B, S, H) bf16
    B = hidden.shape[0]

    # attention_mask.view(B, -1)[:, None, None, :]; (1 - m) * -10000
    # conceptual shape (B, 1, 1, S); stored lane-dense as (B, 1, S) f32.
    mask = attention_mask.reshape(B, -1).astype(jnp.float32)
    mask_bias = ((1.0 - mask) * -10000.0)[:, None, :]              # (B, 1, S)

    num_blocks = len(params["blocks"])
    alpha = (2.0 * num_blocks) ** 0.25                             # DeepNet encoder alpha

    for blk in params["blocks"]:
        hidden, mask_bias = deepnet_block_apply(hidden, mask_bias, blk,
                                                n_heads, alpha)

    # final norm + LM head; head weights are stored pre-padded along vocab so
    # the N tile never falls back to the full vocab; logits come out in bf16
    # (halves the writeback of the largest tensor) and are sliced to vocab.
    B, S, H = hidden.shape
    h2 = layernorm(hidden.reshape(B * S, H), params["norm_g"], params["norm_b"])
    logits = linear(h2, params["head_w"], params["head_b"],
                    out_dtype=jnp.bfloat16)
    vocab = params["embed"].shape[0]
    return logits.reshape(B, S, -1)[:, :, :vocab]


# ----------------------------- parameter init -------------------------------

def init_params(key, *, vocab, hidden, ffn, n_blocks, head_pad=256):
    keys = jax.random.split(key, 2 + 6 * n_blocks)
    ki = iter(keys)
    scale = 0.02

    def w(shape):  # matmul weights stored in bf16 (MXU dtype)
        return (scale * jax.random.normal(next(ki), shape, jnp.float32)
                ).astype(jnp.bfloat16)

    vocab_pad = _round_up(vocab, head_pad)
    params = {
        "embed": w((vocab, hidden)),
        "norm_g": jnp.ones((hidden,), jnp.float32),
        "norm_b": jnp.zeros((hidden,), jnp.float32),
        "head_w": jnp.pad(w((hidden, vocab)), ((0, 0), (0, vocab_pad - vocab))),
        "head_b": jnp.zeros((vocab_pad,), jnp.float32),
        "blocks": [],
    }
    for _ in range(n_blocks):
        blk = {
            "wq": w((hidden, hidden)), "bq": jnp.zeros((hidden,), jnp.float32),
            "wk": w((hidden, hidden)), "bk": jnp.zeros((hidden,), jnp.float32),
            "wv": w((hidden, hidden)), "bv": jnp.zeros((hidden,), jnp.float32),
            "wo": w((hidden, hidden)), "bo": jnp.zeros((hidden,), jnp.float32),
            "w1": w((hidden, ffn)), "b1": jnp.zeros((ffn,), jnp.float32),
            "w2": w((ffn, hidden)), "b2": jnp.zeros((hidden,), jnp.float32),
            "ln1_g": jnp.ones((hidden,), jnp.float32),
            "ln1_b": jnp.zeros((hidden,), jnp.float32),
            "ln2_g": jnp.ones((hidden,), jnp.float32),
            "ln2_b": jnp.zeros((hidden,), jnp.float32),
        }
        params["blocks"].append(blk)
    return params


# --------------------------------- main -------------------------------------

if __name__ == "__main__":
    B, S, H, NH, FFN, VOCAB, NBLK = 2, 8, 32, 4, 64, 64, 2

    key = jax.random.PRNGKey(0)
    k_param, k_ids = jax.random.split(key)
    params = init_params(k_param, vocab=VOCAB, hidden=H, ffn=FFN, n_blocks=NBLK)

    input_ids = jax.random.randint(k_ids, (B, S), 0, VOCAB, dtype=jnp.int32)
    attention_mask = jnp.ones((B, S), jnp.float32).at[1, 6:].set(0.0)  # pad last 2 of batch 1

    out = pipeline_deepnet_forward(params, input_ids, attention_mask, n_heads=NH)
    out = jax.block_until_ready(out)

    assert out.shape == (B, S, VOCAB), out.shape
    assert bool(jnp.all(jnp.isfinite(out.astype(jnp.float32))))
    print("KERNEL_OK")
</pallas_src>

<mosaic_0001>
module attributes {stable_mosaic.version = 11 : i64} {
  func.func @_matmul_kernel(%arg0: i32, %arg1: i32, %arg2: i32, %arg3: memref<16x32xbf16, #tpu.memory_space<vmem>>, %arg4: memref<32x32xbf16, #tpu.memory_space<vmem>>, %arg5: memref<1x32xf32, #tpu.memory_space<vmem>>, %arg6: memref<16x32xbf16, #tpu.memory_space<vmem>>, %arg7: memref<16x32xf32, #tpu.memory_space<vmem>>) attributes {dimension_semantics = [#tpu.dimension_semantics<parallel>, #tpu.dimension_semantics<parallel>, #tpu.dimension_semantics<arbitrary>], iteration_bounds = array<i64: 1, 1, 1>, scalar_prefetch = 0 : i64, scratch_operands = 1 : i64, tpu.core_type = #tpu.core_type<tc>, window_params = [{transform_indices = @transform_0, window_bounds = array<i64: 16, 32>}, {transform_indices = @transform_1, window_bounds = array<i64: 32, 32>}, {transform_indices = @transform_2, window_bounds = array<i64: 1, 32>}, {transform_indices = @transform_3, window_bounds = array<i64: 16, 32>}]} {
    %c0_i32 = arith.constant 0 : i32
    %0 = arith.cmpi eq, %arg2, %c0_i32 : i32
    %1 = arith.extui %0 : i1 to i32
    %c0_i32_0 = arith.constant 0 : i32
    %2 = arith.cmpi ne, %1, %c0_i32_0 : i32
    scf.if %2 {
      %cst_10 = arith.constant 0.000000e+00 : f32
      %12 = vector.broadcast %cst_10 : f32 to vector<16x32xf32>
      %c0_11 = arith.constant 0 : index
      %c0_12 = arith.constant 0 : index
      %13 = vector.load %arg7[%c0_11, %c0_12] : memref<16x32xf32, #tpu.memory_space<vmem>>, vector<16x32xf32>
      tpu.vector_store %arg7[%c0_11, %c0_12], %12 {strides = array<i32>} : memref<16x32xf32, #tpu.memory_space<vmem>>, vector<16x32xf32>,
    } else {
    }
    %c0 = arith.constant 0 : index
    %c0_1 = arith.constant 0 : index
    %3 = vector.load %arg7[%c0, %c0_1] : memref<16x32xf32, #tpu.memory_space<vmem>>, vector<16x32xf32>
    %c0_2 = arith.constant 0 : index
    %c0_3 = arith.constant 0 : index
    %4 = vector.load %arg3[%c0_2, %c0_3] : memref<16x32xbf16, #tpu.memory_space<vmem>>, vector<16x32xbf16>
    %c0_4 = arith.constant 0 : index
    %c0_5 = arith.constant 0 : index
    %5 = vector.load %arg4[%c0_4, %c0_5] : memref<32x32xbf16, #tpu.memory_space<vmem>>, vector<32x32xbf16>
    %cst = arith.constant dense<0.000000e+00> : vector<16x32xf32>
    %6 = tpu.matmul %4, %5, %cst {dimension_numbers = #tpu.dot_dimension_numbers<[1], [0], [0], [1], [0, 0, 1, 1], [], []>} : vector<16x32xbf16>, vector<32x32xbf16>, vector<16x32xf32> -> vector<16x32xf32>
    %7 = arith.addf %3, %6 : vector<16x32xf32>
    %c0_6 = arith.constant 0 : index
    %c0_7 = arith.constant 0 : index
    %8 = vector.load %arg7[%c0_6, %c0_7] : memref<16x32xf32, #tpu.memory_space<vmem>>, vector<16x32xf32>
    tpu.vector_store %arg7[%c0_6, %c0_7], %7 {strides = array<i32>} : memref<16x32xf32, #tpu.memory_space<vmem>>, vector<16x32xf32>,
    %c0_i32_8 = arith.constant 0 : i32
    %9 = arith.cmpi eq, %arg2, %c0_i32_8 : i32
    %10 = arith.extui %9 : i1 to i32
    %c0_i32_9 = arith.constant 0 : i32
    %11 = arith.cmpi ne, %10, %c0_i32_9 : i32
    scf.if %11 {
      %c0_10 = arith.constant 0 : index
      %c0_11 = arith.constant 0 : index
      %12 = vector.load %arg7[%c0_10, %c0_11] : memref<16x32xf32, #tpu.memory_space<vmem>>, vector<16x32xf32>
      %c0_12 = arith.constant 0 : index
      %c0_13 = arith.constant 0 : index
      %13 = vector.load %arg5[%c0_12, %c0_13] : memref<1x32xf32, #tpu.memory_space<vmem>>, vector<1x32xf32>
      %14 = vector.broadcast %13 : vector<1x32xf32> to vector<16x32xf32>
      %15 = arith.addf %12, %14 : vector<16x32xf32>
      %16 = arith.truncf %15 : vector<16x32xf32> to vector<16x32xbf16>
      %c0_14 = arith.constant 0 : index
      %c0_15 = arith.constant 0 : index
      %17 = vector.load %arg6[%c0_14, %c0_15] : memref<16x32xbf16, #tpu.memory_space<vmem>>, vector<16x32xbf16>
      tpu.vector_store %arg6[%c0_14, %c0_15], %16 {strides = array<i32>} : memref<16x32xbf16, #tpu.memory_space<vmem>>, vector<16x32xbf16>,
    } else {
    }
    return
  }
  func.func @transform_0(%arg0: i32, %arg1: i32, %arg2: i32) -> (i32, i32) {
    %c0_i32 = arith.constant 0 : i32
    return %arg0, %arg2 : i32, i32
  }
  func.func @transform_1(%arg0: i32, %arg1: i32, %arg2: i32) -> (i32, i32) {
    %c0_i32 = arith.constant 0 : i32
    return %arg2, %arg1 : i32, i32
  }
  func.func @transform_2(%arg0: i32, %arg1: i32, %arg2: i32) -> (i32, i32) {
    %c0_i32 = arith.constant 0 : i32
    %c0_i32_0 = arith.constant 0 : i32
    return %c0_i32, %arg1 : i32, i32
  }
  func.func @transform_3(%arg0: i32, %arg1: i32, %arg2: i32) -> (i32, i32) {
    %c0_i32 = arith.constant 0 : i32
    return %arg0, %arg1 : i32, i32
  }
}

</mosaic_0001>

<bundles_post_ra>
// kernel: tpu_custom_call.1
= control target key start
LH: loop header
LB: loop body
LE: loop exit
PB: predicated region body
PF: predicated region fallthrough
CT: control target
= control target key end

     0   :  { %8 = vsyncpa [#allocation4], 0  ;;  %s291_s0 = inlined_call_operand.hbm [shape: bf16[16,32], index: 0, kind: input, shape index: {}]   ;;  %s292_s1 = inlined_call_operand.hbm [shape: bf16[32,32], index: 1, kind: input, shape index: {}]   ;;  %s293_s2 = inlined_call_operand.vmem [shape: f32[1,32], index: 2, kind: input, shape index: {}]   ;;  %s294_s3 = inlined_call_operand.hbm [shape: bf16[16,32], index: 3, kind: output, shape index: {}]  }
   0x1   :  { %9 = vsyncpa [#allocation7], 0 }
   0x2   :  { %10 = vsyncpa [#allocation5], 0  ;;  %s15_s14 = sshll.u32 %s291_s0, 4  ;;  %s239_s15 = smov [#allocation3]   ;;  %s16_s14 = int_to_ptr.hbm [resolvable:$true] %s15_s14 }
   0x3   :  { %s17_s16 = sshll.u32 %s239_s15, 4  ;;  %s28_s19 = sshll.u32 %s292_s1, 4  ;;  %s18_s16 = int_to_ptr.vmem [resolvable:$true] %s17_s16  ;;  %s29_s19 = int_to_ptr.hbm [resolvable:$true] %s28_s19 }
   0x4   :  { %s240_s20 = smov 64   ;;  %s241_s21 = smov 4  }
   0x5   :  { %23 = dma.hbm_to_vmem [thread:$0]  %s16_s14, 128, %s18_s16, [#allocation4], %s240_s20, %s240_s20, %s241_s21  }
   0x6   :  { %s242_s22 = smov [#allocation6]  }
   0x7   :  { %s30_s23 = sshll.u32 %s242_s22, 4  ;;  %s31_s23 = int_to_ptr.vmem [resolvable:$true] %s30_s23 }
   0x8   :  { %36 = dma.hbm_to_vmem [thread:$0]  %s29_s19, 256, %s31_s23, [#allocation7], %s240_s20, %s240_s20, %s241_s21  }
   0x9   :  { %233 = dma.done.wait [#allocation4], 128  }
   0xa   :  { %234 = vsyncadd [#allocation4], 4294967168 }
   0xb   :  { %235 = dma.done.wait [#allocation7], 256  }
   0xc   :  { %236 = vsyncadd [#allocation7], 4294967040  ;;  %vm52_vm0 = vcmask 261120   ;;  %v243_v0 = vmov 0.0   ;;  %v153_v1 = vld [vmem:[#allocation6 + $0x8] sm:$0xff]  ;;  %v152_v2 = vld [vmem:[#allocation6] sm:$0xff] }
   0xd   :  { %53 = vst.msk [vmem:[#allocation2] sm:$0xff] %vm52_vm0, %v243_v0  ;;  %90 = vmatpush.bf16.msra.mxu0 %v153_v1  ;;  %v151_v3 = vld [vmem:[#allocation3] sm:$0xff]  ;;  %v160_v8 = vld [vmem:[%s293_s2] ss:$0 sm:$0xff]  ;;  %vm115_vm1 = vcmask 257024   ;;  %s244_s24 = smov [#allocation8]  }
   0xe   :  { %54 = vst.msk [vmem:[#allocation2 + $0x8] sm:$0xff] %vm52_vm0, %v243_v0  ;;  %s122_s25 = sshll.u32 %s244_s24, 4  ;;  %s124_s28 = sshll.u32 %s294_s3, 4  ;;  %s123_s25 = int_to_ptr.vmem [resolvable:$true] %s122_s25  ;;  %s125_s28 = int_to_ptr.hbm [resolvable:$true] %s124_s28 }
  0x11   :  { %91 = vmatpush.bf16.msra.mxu0 %v152_v2 }
  0x14   :  { %150 = vmatmul.msk.bf16.vlgmr.msra.gmra.mxu0 %vm52_vm0, %v151_v3  ;;  %v55_v4 = vld [vmem:[#allocation2] sm:$0xff] }
  0x15   :  { %v56_v7 = vld [vmem:[#allocation2 + $0x8] sm:$0xff] }
  0x91   :  { %v93_v5 = vpop.f32.mrf.mxu0 }
  0x92   :  { %v98_v6 = vadd.f32 %v93_v5, %v55_v4 }
  0x94   :  { %100 = vst.msk [vmem:[#allocation2] sm:$0xff] %vm52_vm0, %v98_v6 }
  0x99   :  { %v95_v9 = vpop.f32.mrf.mxu0 }
  0x9a   :  { %v99_v10 = vadd.f32 %v95_v9, %v56_v7 }
  0x9b   :  { %v105_v11 = vld [vmem:[#allocation2] sm:$0xff] }
  0x9c   :  { %101 = vst.msk [vmem:[#allocation2 + $0x8] sm:$0xff] %vm52_vm0, %v99_v10  ;;  %v111_v12 = vadd.f32 %v160_v8, %v105_v11 }
  0x9e   :  { %v113_v13 = vpack.c.bf16 %v111_v12, %v111_v12 }
  0xa0   :  { %116 = vst.msk [vmem:[#allocation8] sm:$0xf] %vm115_vm1, %v113_v13 }
  0xa3   :  { %v106_v14 = vld [vmem:[#allocation2 + $0x8] sm:$0xff] }
  0xa4   :  { %v112_v15 = vadd.f32 %v160_v8, %v106_v14 }
  0xa6   :  { %v114_v16 = vpack.c.bf16 %v112_v15, %v112_v15 }
  0xa8   :  { %117 = vst.msk [vmem:[#allocation8 + $0x4] sm:$0xf] %vm115_vm1, %v114_v16 }
  0xa9   :  { %130 = dma.vmem_to_hbm [thread:$0]  %s123_s25, 128, %s125_s28, [#allocation5], %s240_s20, %s240_s20, %s241_s21  }
  0xaa   :  { %237 = dma.done.wait [#allocation5], 128  }
  0xab   :  { %238 = vsyncadd [#allocation5], 4294967168 }
  0xac   :  { %135 = vsyncpa [#allocation4], 1 }
  0xad   :  { %136 = vsyncpa [#allocation7], 1 }
  0xae   :  { %137 = vsyncpa [#allocation5], 1 }

</bundles_post_ra>
